<compile_context>
chip_gen: v7x
topology: tpu7x:2x2x1
jax: 0.10.0
libtpu: 0.0.40
codegen_flags: <defaults>
</compile_context>

<pallas_src>
import functools

import jax
import jax.numpy as jnp
from jax import lax
from jax.experimental import pallas as pl
from jax.experimental.pallas import tpu as pltpu

HI = lax.Precision.HIGHEST


def _prod(xs):
    out = 1
    for x in xs:
        out *= x
    return out


def _pick_tile(dim, target, align):
    """Largest aligned tile <= target that divides dim; whole dim if none."""
    if dim <= target:
        return dim
    t = (target // align) * align
    while t >= align:
        if dim % t == 0:
            return t
        t -= align
    return dim


# --------------------------------------------------------------------------
# Pallas kernels
# --------------------------------------------------------------------------
def router_kernel(x_ref, w1_ref, b1_ref, w2_ref, b2_ref, logits_ref, acc_ref,
                  *, seq_len):
    """MultiStepRouter ('multi_layer'): streamed mean-pool(seq) -> MLP."""
    si = pl.program_id(1)

    @pl.when(si == 0)
    def _():
        acc_ref[...] = jnp.zeros_like(acc_ref)

    # Accumulate the seq-sum of this tile (reference does X.float().mean(dim=1)).
    acc_ref[...] += jnp.sum(x_ref[...].astype(jnp.float32), axis=1)

    @pl.when(si == pl.num_programs(1) - 1)
    def _():
        pooled = acc_ref[...] * (1.0 / seq_len)                      # [bB, D]
        h = jnp.dot(pooled, w1_ref[...],
                    preferred_element_type=jnp.float32) + b1_ref[...]
        h = jnp.maximum(h, 0.0)
        logits = jnp.dot(h, w2_ref[...],
                         preferred_element_type=jnp.float32) + b2_ref[...]
        logits_ref[...] = logits.astype(logits_ref.dtype)


def moe_linear_kernel(eid_ref, x_ref, w_ref, o_ref, acc_ref):
    """One (batch, seq-tile, N-tile) output block: acc += X_tile @ W_merged_tile.

    eid_ref (scalar-prefetch expert ids) is only used by the index_maps; the
    weight ref already holds the selected expert's [tK, tN] slab.
    """
    ki = pl.program_id(3)

    @pl.when(ki == 0)
    def _():
        acc_ref[...] = jnp.zeros_like(acc_ref)

    # Native-dtype operands straight into the MXU; accumulate in f32.
    acc_ref[...] += jnp.dot(x_ref[...], w_ref[...],
                            preferred_element_type=jnp.float32)

    @pl.when(ki == pl.num_programs(3) - 1)
    def _():
        o_ref[...] = acc_ref[...].astype(o_ref.dtype)


# --------------------------------------------------------------------------
# Wrappers
# --------------------------------------------------------------------------
def router_forward(x, w1, b1, w2, b2):
    """Router logits.  w1 [D,H], w2 [H,E] are pre-transposed; b1 [1,H], b2 [1,E]."""
    B, S, D = x.shape
    H = w1.shape[1]
    E = w2.shape[1]
    bB = _pick_tile(B, 8, 8)
    tS = _pick_tile(S, 256, 8)
    grid = (B // bB, S // tS)

    kernel = functools.partial(router_kernel, seq_len=S)
    return pl.pallas_call(
        kernel,
        out_shape=jax.ShapeDtypeStruct((B, E), jnp.float32),
        grid_spec=pltpu.PrefetchScalarGridSpec(
            num_scalar_prefetch=0,
            grid=grid,
            in_specs=[
                pl.BlockSpec((bB, tS, D), lambda bi, si: (bi, si, 0)),
                pl.BlockSpec((D, H), lambda bi, si: (0, 0)),
                pl.BlockSpec((1, H), lambda bi, si: (0, 0)),
                pl.BlockSpec((H, E), lambda bi, si: (0, 0)),
                pl.BlockSpec((1, E), lambda bi, si: (0, 0)),
            ],
            out_specs=pl.BlockSpec((bB, E), lambda bi, si: (bi, 0)),
            scratch_shapes=[pltpu.VMEM((bB, D), jnp.float32)],
        ),
        compiler_params=pltpu.CompilerParams(
            dimension_semantics=("parallel", "arbitrary")),
    )(x, w1, b1, w2, b2)


def moe_projection(x, expert_ids, merged_w):
    """out[b] = X[b] @ merged_w[expert_ids[b]]  (== alpha*TT-LoRA + base linear)."""
    B, S, m = x.shape
    E, m2, n = merged_w.shape
    assert m == m2
    tS = _pick_tile(S, 256, 8)      # >=256-row MXU tiles when S allows
    tN = _pick_tile(n, 256, 128)    # lane-dense output tiles (multiples of 128)
    tK = _pick_tile(m, 512, 128)    # K streamed so large m never blows VMEM
    grid = (B, S // tS, n // tN, m // tK)

    def x_map(b, si, ni, ki, eid):
        return (b, si, ki)

    def w_map(b, si, ni, ki, eid):
        # Scalar-prefetched expert id: DMA only the selected expert's weight tile.
        return (eid[b], ki, ni)

    def o_map(b, si, ni, ki, eid):
        return (b, si, ni)

    return pl.pallas_call(
        moe_linear_kernel,
        out_shape=jax.ShapeDtypeStruct((B, S, n), x.dtype),
        grid_spec=pltpu.PrefetchScalarGridSpec(
            num_scalar_prefetch=1,
            grid=grid,
            in_specs=[
                pl.BlockSpec((None, tS, tK), x_map),
                pl.BlockSpec((None, tK, tN), w_map),
            ],
            out_specs=pl.BlockSpec((None, tS, tN), o_map),
            scratch_shapes=[pltpu.VMEM((tS, tN), jnp.float32)],
        ),
        compiler_params=pltpu.CompilerParams(
            dimension_semantics=("parallel", "parallel", "parallel", "arbitrary")),
    )(expert_ids, x, merged_w)


# --------------------------------------------------------------------------
# One-time parameter setup (glue)
# --------------------------------------------------------------------------
def ref_tt_mult(X, tt_cores, m_factors, n_factors, gates):
    """Pure-JAX mirror of tensorized_multiplication_experts (reference + setup)."""
    B, S, _ = X.shape
    tt_state = X.reshape((B, S) + tuple(m_factors[::-1]))[:, None]
    num_m, num_n = len(m_factors), len(n_factors)
    for i in range(num_m):
        masked = jnp.einsum('be,erfp->brfp', gates, tt_cores[i], precision=HI)
        tt_state = jnp.einsum('br...m,brmp->bp...', tt_state, masked, precision=HI)
    for i in range(num_n):
        masked = jnp.einsum('be,erfp->brfp', gates, tt_cores[num_m + i], precision=HI)
        tt_state = jnp.einsum('br...,brnp->bp...n', tt_state, masked, precision=HI)
    return tt_state.reshape(B, S, -1)


def collapse_tt_cores(tt_cores, m_factors, n_factors):
    """Collapse each expert's TT-core chain into a dense [m, n] matrix.

    The TT contraction is a fixed linear map per expert (gates are one-hot in
    this module's forward), so applying it to I_m yields exactly M_e with
    tensorized_multiplication_experts(X)[b] = X[b] @ M_{expert(b)}.
    """
    E = tt_cores[0].shape[0]
    m = _prod(m_factors)
    eye_m = jnp.eye(m, dtype=jnp.float32)[None]          # [1, m(seq), m(feat)]
    gate_eye = jnp.eye(E, dtype=jnp.float32)
    mats = [ref_tt_mult(eye_m, tt_cores, m_factors, n_factors, gate_eye[e][None])[0]
            for e in range(E)]
    return jnp.stack(mats)                               # [E, m, n]


def build_moe_merged_weights(w_base, tt_cores, m_factors, n_factors, alpha):
    """W_merged[e] = W_base.T + alpha * collapsed_TT[e], shape [E, m, n].

    Computed once at setup (includes the weight transpose); the per-token kernel
    is then a single MXU GEMM per tile.
    """
    delta = collapse_tt_cores(tt_cores, m_factors, n_factors)         # [E, m, n]
    w_t = jnp.transpose(w_base).astype(delta.dtype)                   # [m, n]
    return w_t[None, :, :] + float(alpha) * delta


def ref_custom_forward(X, w_base, gates, tt_cores, m_factors, n_factors, alpha):
    base = jnp.einsum('bsm,nm->bsn', X, w_base, precision=HI)
    z = ref_tt_mult(X, tt_cores, m_factors, n_factors, gates)
    return alpha * z + base


# --------------------------------------------------------------------------
if __name__ == "__main__":
    # Small llama-style config (the 'llama' branch: q_proj / v_proj, bias=None).
    B, S = 2, 8
    num_experts = 4
    m_factors_q, n_factors_q = [2, 2, 2, 4], [4, 2, 2, 2]      # 8 query TT cores
    m_factors_v, n_factors_v = [4, 2, 2, 2], [2, 2, 2, 4]      # 8 value TT cores
    rank = 2
    common_alpha = 8.0
    gumbel_temperature = 1.0
    hidden = _prod(m_factors_q)                                # 32
    router_hidden = 1024                                       # MultiStepRouter hard-codes 1024

    key = jax.random.PRNGKey(0)
    ks = jax.random.split(key, 8)
    X = jax.random.normal(ks[0], (B, S, hidden), jnp.float32)

    # Router parameters (MultiStepRouter, router_type='multi_layer').
    w_expand = 0.05 * jax.random.normal(ks[1], (router_hidden, hidden), jnp.float32)
    b_expand = 0.05 * jax.random.normal(ks[2], (router_hidden,), jnp.float32)
    w_project = 0.05 * jax.random.normal(ks[3], (num_experts, router_hidden), jnp.float32)
    b_project = 0.05 * jax.random.normal(ks[4], (num_experts,), jnp.float32)

    # Frozen base q/v projection weights (llama: bias=None).
    w_q = 0.1 * jax.random.normal(ks[5], (_prod(n_factors_q), _prod(m_factors_q)), jnp.float32)
    w_v = 0.1 * jax.random.normal(ks[6], (_prod(n_factors_v), _prod(m_factors_v)), jnp.float32)

    def make_cores(k, m_factors, n_factors):
        factors = list(m_factors) + list(n_factors)
        ranks = [1] + [rank] * (len(factors) - 1) + [1]
        cores = []
        for i, f in enumerate(factors):
            k, sub = jax.random.split(k)
            cores.append(0.3 * jax.random.normal(
                sub, (num_experts, ranks[i], f, ranks[i + 1]), jnp.float32))
        return cores

    cores_q = make_cores(jax.random.PRNGKey(1), m_factors_q, n_factors_q)
    cores_v = make_cores(jax.random.PRNGKey(2), m_factors_v, n_factors_v)

    # ---- one-time parameter setup (glue) ---------------------------------
    w1 = jnp.transpose(w_expand)              # [D, 1024]   (pre-transposed once)
    b1 = b_expand.reshape(1, -1)
    w2 = jnp.transpose(w_project)             # [1024, E]
    b2 = b_project.reshape(1, -1)
    merged_q = build_moe_merged_weights(w_q, cores_q, m_factors_q, n_factors_q, common_alpha)
    merged_v = build_moe_merged_weights(w_v, cores_v, m_factors_v, n_factors_v, common_alpha)

    # ---- forward pass ----------------------------------------------------
    # 1) router logits (Pallas kernel, streamed seq pooling)
    logits = router_forward(X, w1, b1, w2, b2)

    # 2) hard gumbel-softmax selection (forward value of F.gumbel_softmax(hard=True))
    u = jax.random.uniform(jax.random.PRNGKey(42), logits.shape,
                           minval=1e-6, maxval=1.0 - 1e-6)
    gumbel = -jnp.log(-jnp.log(u))
    expert_ids = jnp.argmax((logits + gumbel) / gumbel_temperature, axis=-1).astype(jnp.int32)
    gates = jax.nn.one_hot(expert_ids, num_experts, dtype=jnp.float32)

    # 3) MoE TT-LoRA adapted query / value projections (Pallas kernel,
    #    scalar-prefetched expert id, one GEMM per output tile)
    q_out = moe_projection(X, expert_ids, merged_q)
    v_out = moe_projection(X, expert_ids, merged_v)
    logits, q_out, v_out = jax.block_until_ready((logits, q_out, v_out))

    # ---- reference check ---------------------------------------------------
    pooled = jnp.mean(X, axis=1)
    h = jnp.maximum(jnp.dot(pooled, w_expand.T, precision=HI) + b_expand, 0.0)
    logits_ref = jnp.dot(h, w_project.T, precision=HI) + b_project
    q_ref = ref_custom_forward(X, w_q, gates, cores_q, m_factors_q, n_factors_q, common_alpha)
    v_ref = ref_custom_forward(X, w_v, gates, cores_v, m_factors_v, n_factors_v, common_alpha)

    assert jnp.allclose(logits, logits_ref, atol=5e-3, rtol=5e-3)
    assert jnp.allclose(q_out, q_ref, atol=5e-3, rtol=5e-3)
    assert jnp.allclose(v_out, v_ref, atol=5e-3, rtol=5e-3)

    print("KERNEL_OK")
</pallas_src>

<mosaic_0001>
module attributes {stable_mosaic.version = 11 : i64} {
  func.func @router_kernel(%arg0: i32, %arg1: i32, %arg2: memref<2x8x32xf32, #tpu.memory_space<vmem>>, %arg3: memref<32x1024xf32, #tpu.memory_space<vmem>>, %arg4: memref<1x1024xf32, #tpu.memory_space<vmem>>, %arg5: memref<1024x4xf32, #tpu.memory_space<vmem>>, %arg6: memref<1x4xf32, #tpu.memory_space<vmem>>, %arg7: memref<2x4xf32, #tpu.memory_space<vmem>>, %arg8: memref<2x32xf32, #tpu.memory_space<vmem>>) attributes {dimension_semantics = [#tpu.dimension_semantics<parallel>, #tpu.dimension_semantics<arbitrary>], iteration_bounds = array<i64: 1, 1>, scalar_prefetch = 0 : i64, scratch_operands = 1 : i64, tpu.core_type = #tpu.core_type<tc>, window_params = [{transform_indices = @transform_0, window_bounds = array<i64: 2, 8, 32>}, {pipeline_mode = #tpu.pipeline_mode<synchronous>, transform_indices = @transform_1, window_bounds = array<i64: 32, 1024>}, {pipeline_mode = #tpu.pipeline_mode<synchronous>, transform_indices = @transform_2, window_bounds = array<i64: 1, 1024>}, {pipeline_mode = #tpu.pipeline_mode<synchronous>, transform_indices = @transform_3, window_bounds = array<i64: 1024, 4>}, {pipeline_mode = #tpu.pipeline_mode<synchronous>, transform_indices = @transform_4, window_bounds = array<i64: 1, 4>}, {transform_indices = @transform_5, window_bounds = array<i64: 2, 4>}]} {
    %c0_i32 = arith.constant 0 : i32
    %0 = arith.cmpi eq, %arg1, %c0_i32 : i32
    %1 = arith.extui %0 : i1 to i32
    %c0_i32_0 = arith.constant 0 : i32
    %2 = arith.cmpi ne, %1, %c0_i32_0 : i32
    scf.if %2 {
      %cst_9 = arith.constant 0.000000e+00 : f32
      %11 = vector.broadcast %cst_9 : f32 to vector<2x32xf32>
      %c0_10 = arith.constant 0 : index
      %c0_11 = arith.constant 0 : index
      %12 = vector.load %arg8[%c0_10, %c0_11] : memref<2x32xf32, #tpu.memory_space<vmem>>, vector<2x32xf32>
      tpu.vector_store %arg8[%c0_10, %c0_11], %11 {strides = array<i32>} : memref<2x32xf32, #tpu.memory_space<vmem>>, vector<2x32xf32>,
    } else {
    }
    %c0 = arith.constant 0 : index
    %c0_1 = arith.constant 0 : index
    %3 = vector.load %arg8[%c0, %c0_1] : memref<2x32xf32, #tpu.memory_space<vmem>>, vector<2x32xf32>
    %c0_2 = arith.constant 0 : index
    %c0_3 = arith.constant 0 : index
    %c0_4 = arith.constant 0 : index
    %4 = vector.load %arg2[%c0_2, %c0_3, %c0_4] : memref<2x8x32xf32, #tpu.memory_space<vmem>>, vector<2x8x32xf32>
    %cst = arith.constant dense<0.000000e+00> : vector<2x32xf32>
    %5 = vector.multi_reduction <add>, %4, %cst [1] : vector<2x8x32xf32> to vector<2x32xf32>
    %6 = arith.addf %3, %5 : vector<2x32xf32>
    %c0_5 = arith.constant 0 : index
    %c0_6 = arith.constant 0 : index
    %7 = vector.load %arg8[%c0_5, %c0_6] : memref<2x32xf32, #tpu.memory_space<vmem>>, vector<2x32xf32>
    tpu.vector_store %arg8[%c0_5, %c0_6], %6 {strides = array<i32>} : memref<2x32xf32, #tpu.memory_space<vmem>>, vector<2x32xf32>,
    %c0_i32_7 = arith.constant 0 : i32
    %8 = arith.cmpi eq, %arg1, %c0_i32_7 : i32
    %9 = arith.extui %8 : i1 to i32
    %c0_i32_8 = arith.constant 0 : i32
    %10 = arith.cmpi ne, %9, %c0_i32_8 : i32
    scf.if %10 {
      %c0_9 = arith.constant 0 : index
      %c0_10 = arith.constant 0 : index
      %11 = vector.load %arg8[%c0_9, %c0_10] : memref<2x32xf32, #tpu.memory_space<vmem>>, vector<2x32xf32>
      %cst_11 = arith.constant 1.250000e-01 : f32
      %12 = vector.broadcast %cst_11 : f32 to vector<2x32xf32>
      %13 = arith.mulf %11, %12 : vector<2x32xf32>
      %c0_12 = arith.constant 0 : index
      %c0_13 = arith.constant 0 : index
      %14 = vector.load %arg3[%c0_12, %c0_13] : memref<32x1024xf32, #tpu.memory_space<vmem>>, vector<32x1024xf32>
      %cst_14 = arith.constant dense<0.000000e+00> : vector<2x1024xf32>
      %15 = tpu.matmul %13, %14, %cst_14 {dimension_numbers = #tpu.dot_dimension_numbers<[1], [0], [0], [1], [0, 0, 1, 1], [], []>} : vector<2x32xf32>, vector<32x1024xf32>, vector<2x1024xf32> -> vector<2x1024xf32>
      %c0_15 = arith.constant 0 : index
      %c0_16 = arith.constant 0 : index
      %16 = vector.load %arg4[%c0_15, %c0_16] : memref<1x1024xf32, #tpu.memory_space<vmem>>, vector<1x1024xf32>
      %17 = vector.broadcast %16 : vector<1x1024xf32> to vector<2x1024xf32>
      %18 = arith.addf %15, %17 : vector<2x1024xf32>
      %cst_17 = arith.constant 0.000000e+00 : f32
      %19 = vector.broadcast %cst_17 : f32 to vector<2x1024xf32>
      %20 = arith.maximumf %18, %19 : vector<2x1024xf32>
      %c0_18 = arith.constant 0 : index
      %c0_19 = arith.constant 0 : index
      %21 = vector.load %arg5[%c0_18, %c0_19] : memref<1024x4xf32, #tpu.memory_space<vmem>>, vector<1024x4xf32>
      %cst_20 = arith.constant dense<0.000000e+00> : vector<2x4xf32>
      %22 = tpu.matmul %20, %21, %cst_20 {dimension_numbers = #tpu.dot_dimension_numbers<[1], [0], [0], [1], [0, 0, 1, 1], [], []>} : vector<2x1024xf32>, vector<1024x4xf32>, vector<2x4xf32> -> vector<2x4xf32>
      %c0_21 = arith.constant 0 : index
      %c0_22 = arith.constant 0 : index
      %23 = vector.load %arg6[%c0_21, %c0_22] : memref<1x4xf32, #tpu.memory_space<vmem>>, vector<1x4xf32>
      %24 = vector.broadcast %23 : vector<1x4xf32> to vector<2x4xf32>
      %25 = arith.addf %22, %24 : vector<2x4xf32>
      %c0_23 = arith.constant 0 : index
      %c0_24 = arith.constant 0 : index
      %26 = vector.load %arg7[%c0_23, %c0_24] : memref<2x4xf32, #tpu.memory_space<vmem>>, vector<2x4xf32>
      tpu.vector_store %arg7[%c0_23, %c0_24], %25 {strides = array<i32>} : memref<2x4xf32, #tpu.memory_space<vmem>>, vector<2x4xf32>,
    } else {
    }
    return
  }
  func.func @transform_0(%arg0: i32, %arg1: i32) -> (i32, i32, i32) {
    %c0_i32 = arith.constant 0 : i32
    %c0_i32_0 = arith.constant 0 : i32
    return %arg0, %arg1, %c0_i32 : i32, i32, i32
  }
  func.func @transform_1(%arg0: i32, %arg1: i32) -> (i32, i32) {
    %c0_i32 = arith.constant 0 : i32
    %c0_i32_0 = arith.constant 0 : i32
    %c0_i32_1 = arith.constant 0 : i32
    return %c0_i32, %c0_i32_0 : i32, i32
  }
  func.func @transform_2(%arg0: i32, %arg1: i32) -> (i32, i32) {
    %c0_i32 = arith.constant 0 : i32
    %c0_i32_0 = arith.constant 0 : i32
    %c0_i32_1 = arith.constant 0 : i32
    return %c0_i32, %c0_i32_0 : i32, i32
  }
  func.func @transform_3(%arg0: i32, %arg1: i32) -> (i32, i32) {
    %c0_i32 = arith.constant 0 : i32
    %c0_i32_0 = arith.constant 0 : i32
    %c0_i32_1 = arith.constant 0 : i32
    return %c0_i32, %c0_i32_0 : i32, i32
  }
  func.func @transform_4(%arg0: i32, %arg1: i32) -> (i32, i32) {
    %c0_i32 = arith.constant 0 : i32
    %c0_i32_0 = arith.constant 0 : i32
    %c0_i32_1 = arith.constant 0 : i32
    return %c0_i32, %c0_i32_0 : i32, i32
  }
  func.func @transform_5(%arg0: i32, %arg1: i32) -> (i32, i32) {
    %c0_i32 = arith.constant 0 : i32
    %c0_i32_0 = arith.constant 0 : i32
    return %arg0, %c0_i32 : i32, i32
  }
}

</mosaic_0001>

<bundles_post_ra>
// kernel: tpu_custom_call.1
= control target key start
LH: loop header
LB: loop body
LE: loop exit
PB: predicated region body
PF: predicated region fallthrough
CT: control target
= control target key end

     0   :  { %vm25_vm0 = vcmask 254976   ;;  %v1189_v7 = vmov 0.0   ;;  %vm30_vm1 = vcmask 261120   ;;  %vm47_vm2 = vcmask 1041409   ;;  %s1764_s0 = inlined_call_operand.vmem [shape: f32[2,8,32], index: 0, kind: input, shape index: {}]   ;;  %s1765_s1 = inlined_call_operand.vmem [shape: f32[32,1024], index: 1, kind: input, shape index: {}]   ;;  %s1766_s2 = inlined_call_operand.vmem [shape: f32[1,1024], index: 2, kind: input, shape index: {}]   ;;  %s1767_s3 = inlined_call_operand.vmem [shape: f32[1024,4], index: 3, kind: input, shape index: {}]   ;;  %s1768_s4 = inlined_call_operand.vmem [shape: f32[1,4], index: 4, kind: input, shape index: {}]   ;;  %s1769_s5 = inlined_call_operand.hbm [shape: f32[2,4], index: 5, kind: output, shape index: {}]  }
   0x1   :  { %v59_v0 = vld [vmem:[%s1765_s1 + $0x8] sm:$0xff]  ;;  %v61_v2 = vld [vmem:[%s1765_s1 + $0x18] sm:$0xff]  ;;  %v58_v5 = vld [vmem:[%s1765_s1] sm:$0xff]  ;;  %26 = vst.msk [vmem:[#allocation2] sm:$0x3] %vm25_vm0, %v1189_v7  ;;  %199 = vmatprep.mubr.f32.mxu0 %v1189_v7  ;;  %270 = vmatprep.mubr.f32.mxu1 %v1189_v7 }
   0x2   :  { %v67_v1 = vld [vmem:[%s1765_s1 + $0x48] sm:$0xff]  ;;  %v69_v4 = vld [vmem:[%s1765_s1 + $0x58] sm:$0xff]  ;;  %v66_v6 = vld [vmem:[%s1765_s1 + $0x40] sm:$0xff] }
   0x3   :  { %v1003_v3 = vpack.c.bf16 %v67_v1, %v59_v0  ;;  %v1011_v8 = vpack.c.bf16 %v69_v4, %v61_v2  ;;  %v1005_v9 = vpack.c.bf16 %v66_v6, %v58_v5  ;;  %v60_v10 = vld [vmem:[%s1765_s1 + $0x10] sm:$0xff]  ;;  %v75_v12 = vld [vmem:[%s1765_s1 + $0x88] sm:$0xff]  ;;  %v77_v15 = vld [vmem:[%s1765_s1 + $0x98] sm:$0xff] }
   0x4   :  { %v68_v11 = vld [vmem:[%s1765_s1 + $0x50] sm:$0xff]  ;;  %v83_v14 = vld [vmem:[%s1765_s1 + $0xc8] sm:$0xff]  ;;  %v85_v16 = vld [vmem:[%s1765_s1 + $0xd8] sm:$0xff] }
   0x5   :  { %1004 = vmatprep.subr.bf16.mxu0 %v1003_v3  ;;  %v1013_v13 = vpack.c.bf16 %v68_v11, %v60_v10  ;;  %1012 = vmatprep.subr.bf16.mxu1 %v1011_v8  ;;  %v1007_v17 = vpack.c.bf16 %v83_v14, %v75_v12  ;;  %v1015_v18 = vpack.c.bf16 %v85_v16, %v77_v15  ;;  %v74_v19 = vld [vmem:[%s1765_s1 + $0x80] sm:$0xff]  ;;  %v76_v21 = vld [vmem:[%s1765_s1 + $0x90] sm:$0xff]  ;;  %v29_v25 = vld [vmem:[%s1764_s0 + $0x8] sm:$0xff] }
   0x6   :  { %1006 = vmatpush1.bf16.msra.mxu0 %v1005_v9  ;;  %v82_v20 = vld [vmem:[%s1765_s1 + $0xc0] sm:$0xff]  ;;  %v84_v23 = vld [vmem:[%s1765_s1 + $0xd0] sm:$0xff]  ;;  %v38_v28 = vsel %vm30_vm1, %v29_v25, 0.0  ;;  %v63_v29 = vld [vmem:[%s1765_s1 + $0x28] sm:$0xff] }
   0x7   :  { %1014 = vmatpush1.bf16.msra.mxu1 %v1013_v13  ;;  %v1009_v22 = vpack.c.bf16 %v82_v20, %v74_v19  ;;  %v28_v24 = vld [vmem:[%s1764_s0] sm:$0xff]  ;;  %1008 = vmatprep.subr.bf16.mxu0 %v1007_v17  ;;  %v1017_v26 = vpack.c.bf16 %v84_v23, %v76_v21  ;;  %v71_v30 = vld [vmem:[%s1765_s1 + $0x68] sm:$0xff]  ;;  %v39_v32 = vrot.slane %v38_v28, 4  ;;  %v65_v34 = vld [vmem:[%s1765_s1 + $0x38] sm:$0xff] }
   0x8   :  { %1016 = vmatprep.subr.bf16.mxu1 %v1015_v18  ;;  %v31_v27 = vsel %vm30_vm1, %v28_v24, 0.0  ;;  %v1019_v33 = vpack.c.bf16 %v71_v30, %v63_v29  ;;  %v73_v35 = vld [vmem:[%s1765_s1 + $0x78] sm:$0xff]  ;;  %v27_v45 = vld [vmem:[#allocation2] sm:$0x3]  ;;  %v64_v52 = vld [vmem:[%s1765_s1 + $0x30] sm:$0xff] }
   0x9   :  { %v32_v31 = vrot.slane %v31_v27, 4  ;;  %v1027_v36 = vpack.c.bf16 %v73_v35, %v65_v34  ;;  %v40_v38 = vadd.f32 %v39_v32, %v38_v28  ;;  %v62_v50 = vld [vmem:[%s1765_s1 + $0x20] sm:$0xff]  ;;  %v72_v53 = vld [vmem:[%s1765_s1 + $0x70] sm:$0xff]  ;;  %v79_v54 = vld [vmem:[%s1765_s1 + $0xa8] sm:$0xff] }
   0xa   :  { %1010 = vmatpush1.bf16.msra.mxu0 %v1009_v22  ;;  %v70_v51 = vld [vmem:[%s1765_s1 + $0x60] sm:$0xff]  ;;  %v87_v55 = vld [vmem:[%s1765_s1 + $0xe8] sm:$0xff]  ;;  %v81_v56 = vld [vmem:[%s1765_s1 + $0xb8] sm:$0xff]  ;;  %v1029_v61 = vpack.c.bf16 %v72_v53, %v64_v52 }
   0xb   :  { %1018 = vmatpush1.bf16.msra.mxu1 %v1017_v26  ;;  %v33_v37 = vadd.f32 %v32_v31, %v31_v27  ;;  %1020 = vmatprep.subr.bf16.mxu0 %v1019_v33  ;;  %v41_v40 = vrot.slane %v40_v38, 2  ;;  %v89_v57 = vld [vmem:[%s1765_s1 + $0xf8] sm:$0xff]  ;;  %v78_v58 = vld [vmem:[%s1765_s1 + $0xa0] sm:$0xff]  ;;  %v1021_v60 = vpack.c.bf16 %v70_v51, %v62_v50  ;;  %v80_v63 = vld [vmem:[%s1765_s1 + $0xb0] sm:$0xff]  ;;  %v1023_v1 = vpack.c.bf16 %v87_v55, %v79_v54 }
   0xc   :  { %1028 = vmatprep.subr.bf16.mxu1 %v1027_v36  ;;  %v86_v62 = vld [vmem:[%s1765_s1 + $0xe0] sm:$0xff]  ;;  %v1031_v2 = vpack.c.bf16 %v89_v57, %v81_v56  ;;  %v88_v3 = vld [vmem:[%s1765_s1 + $0xf0] sm:$0xff]  ;;  %v444_v5 = vld [vmem:[%s1767_s3 + $0x88] sm:$0xff] }
   0xd   :  { %v34_v39 = vrot.slane %v33_v37, 2  ;;  %v42_v42 = vadd.f32 %v41_v40, %v40_v38  ;;  %v443_v4 = vld [vmem:[%s1767_s3 + $0x80] sm:$0xff]  ;;  %v476_v8 = vld [vmem:[%s1767_s3 + $0x188] sm:$0xff] }
   0xe   :  { %v475_v6 = vld [vmem:[%s1767_s3 + $0x180] sm:$0xff] }
   0xf   :  { %v35_v41 = vadd.f32 %v34_v39, %v33_v37  ;;  %v43_v44 = vrot.slane %v42_v42, 1 }
  0x11   :  { %v36_v43 = vrot.slane %v35_v41, 1  ;;  %v44_v47 = vadd.f32 %v43_v44, %v42_v42 }
  0x13   :  { %v37_v46 = vadd.f32 %v36_v43, %v35_v41 }
  0x15   :  { %v48_v48 = vsel %vm47_vm2, %v44_v47, %v37_v46 }
  0x16   :  { %v50_v49 = vadd.f32 %v48_v48, %v27_v45 }
  0x18   :  { %52 = vst.msk [vmem:[#allocation2] sm:$0x3] %vm25_vm0, %v50_v49 }
  0x1f   :  { %v56_v59 = vld [vmem:[#allocation2] sm:$0x3] }
  0x20   :  { %v57_v0 = vmul.f32 0.125, %v56_v59 }
  0x21   :  { %10 = vsyncpa [#allocation4], 0  ;;  %v1025_v9 = vpack.c.bf16 %v86_v62, %v78_v58  ;;  %v1033_v10 = vpack.c.bf16 %v88_v3, %v80_v63  ;;  %v427_v11 = vld [vmem:[%s1767_s3] sm:$0xff]  ;;  %v428_v12 = vld [vmem:[%s1767_s3 + $0x8] sm:$0xff]  ;;  %v1035_v13 = vpack.c.bf16 %v444_v5, %v443_v4  ;;  %v1067_v14 = vpack.c.bf16 %v476_v8, %v475_v6  ;;  %s1190_s19 = smov [#allocation3]  }
  0x22   :  { %858 = vmatmul.mubr.msk.f32.vlgmr.msra.gmra.mrb[0].mxu0 %vm30_vm1, %v57_v0  ;;  %859 = vmatmul.mubr.msk.f32.vlgmr.msra.gmra.mrb[0].mxu1 %vm30_vm1, %v57_v0  ;;  %v459_v15 = vld [vmem:[%s1767_s3 + $0x100] sm:$0xff]  ;;  %v460_v16 = vld [vmem:[%s1767_s3 + $0x108] sm:$0xff]  ;;  %v445_v17 = vld [vmem:[%s1767_s3 + $0x90] sm:$0xff]  ;;  %v1037_v21 = vpack.c.bf16 %v428_v12, %v427_v11  ;;  %s850_s20 = sshll.u32 %s1190_s19, 4  ;;  %vm842_vm3 = vcmask 25600   ;;  %s851_s20 = int_to_ptr.vmem [resolvable:$true] %s850_s20 }
  0x23   :  { %1022 = vmatpush1.bf16.msra.mxu0 %v1021_v60  ;;  %1030 = vmatpush1.bf16.msra.mxu1 %v1029_v61  ;;  %v446_v18 = vld [vmem:[%s1767_s3 + $0x98] sm:$0xff]  ;;  %v477_v19 = vld [vmem:[%s1767_s3 + $0x190] sm:$0xff]  ;;  %v1069_v22 = vpack.c.bf16 %v460_v16, %v459_v15  ;;  %v447_v28 = vld [vmem:[%s1767_s3 + $0xa0] sm:$0xff]  ;;  %p1170_p1 = scmp.lt.s32.totalorder %s851_s20, %s851_s20 }
  0x24   :  { %1024 = vmatprep.subr.bf16.mxu0 %v1023_v1  ;;  %1032 = vmatprep.subr.bf16.mxu1 %v1031_v2  ;;  %v478_v20 = vld [vmem:[%s1767_s3 + $0x198] sm:$0xff]  ;;  %v1039_v24 = vpack.c.bf16 %v446_v18, %v445_v17  ;;  %v461_v26 = vld [vmem:[%s1767_s3 + $0x110] sm:$0xff]  ;;  %v448_v29 = vld [vmem:[%s1767_s3 + $0xa8] sm:$0xff] }
  0x25   :  { %341 = vmatprep.mubr.f32.mxu0 %v1189_v7  ;;  %412 = vmatprep.mubr.f32.mxu1 %v1189_v7  ;;  %v429_v7 = vld [vmem:[%s1767_s3 + $0x10] sm:$0xff]  ;;  %v430_v23 = vld [vmem:[%s1767_s3 + $0x18] sm:$0xff]  ;;  %v1071_v25 = vpack.c.bf16 %v478_v20, %v477_v19  ;;  %v479_v30 = vld [vmem:[%s1767_s3 + $0x1a0] sm:$0xff]  ;;  %v1043_v36 = vpack.c.bf16 %v448_v29, %v447_v28 }
  0x26   :  { %v462_v27 = vld [vmem:[%s1767_s3 + $0x118] sm:$0xff]  ;;  %v480_v31 = vld [vmem:[%s1767_s3 + $0x1a8] sm:$0xff]  ;;  %v1041_v32 = vpack.c.bf16 %v430_v23, %v429_v7  ;;  %v431_v34 = vld [vmem:[%s1767_s3 + $0x20] sm:$0xff] }
  0x27   :  { %1026 = vmatpush1.bf16.msra.mxu0 %v1025_v9  ;;  %1034 = vmatpush1.bf16.msra.mxu1 %v1033_v10  ;;  %v1073_v33 = vpack.c.bf16 %v462_v27, %v461_v26  ;;  %v432_v35 = vld [vmem:[%s1767_s3 + $0x28] sm:$0xff]  ;;  %v1075_v37 = vpack.c.bf16 %v480_v31, %v479_v30  ;;  %v463_v38 = vld [vmem:[%s1767_s3 + $0x120] sm:$0xff]  ;;  %v449_v40 = vld [vmem:[%s1767_s3 + $0xb0] sm:$0xff] }
  0x28   :  { %1036 = vmatprep.subr.bf16.mxu0 %v1035_v13  ;;  %1068 = vmatprep.subr.bf16.mxu1 %v1067_v14  ;;  %v464_v39 = vld [vmem:[%s1767_s3 + $0x128] sm:$0xff]  ;;  %v450_v41 = vld [vmem:[%s1767_s3 + $0xb8] sm:$0xff]  ;;  %v481_v42 = vld [vmem:[%s1767_s3 + $0x1b0] sm:$0xff]  ;;  %v1045_v44 = vpack.c.bf16 %v432_v35, %v431_v34 }
  0x29   :  { %v482_v43 = vld [vmem:[%s1767_s3 + $0x1b8] sm:$0xff]  ;;  %v1077_v45 = vpack.c.bf16 %v464_v39, %v463_v38  ;;  %v433_v46 = vld [vmem:[%s1767_s3 + $0x30] sm:$0xff]  ;;  %v1047_v48 = vpack.c.bf16 %v450_v41, %v449_v40  ;;  %v451_v52 = vld [vmem:[%s1767_s3 + $0xc0] sm:$0xff] }
  0x2a   :  { %860 = vmatmul.mubr.msk.f32.vlgmr.msra.gmra.mrb[2].mxu0 %vm30_vm1, %v57_v0  ;;  %861 = vmatmul.mubr.msk.f32.vlgmr.msra.gmra.mrb[2].mxu1 %vm30_vm1, %v57_v0  ;;  %v434_v47 = vld [vmem:[%s1767_s3 + $0x38] sm:$0xff]  ;;  %v1079_v49 = vpack.c.bf16 %v482_v43, %v481_v42  ;;  %v465_v50 = vld [vmem:[%s1767_s3 + $0x130] sm:$0xff]  ;;  %v452_v53 = vld [vmem:[%s1767_s3 + $0xc8] sm:$0xff] }
  0x2b   :  { %1038 = vmatpush3.bf16.msra.mxu0 %v1037_v21  ;;  %1070 = vmatpush3.bf16.msra.mxu1 %v1069_v22  ;;  %v466_v51 = vld [vmem:[%s1767_s3 + $0x138] sm:$0xff]  ;;  %v483_v54 = vld [vmem:[%s1767_s3 + $0x1c0] sm:$0xff]  ;;  %v484_v55 = vld [vmem:[%s1767_s3 + $0x1c8] sm:$0xff]  ;;  %v1049_v56 = vpack.c.bf16 %v434_v47, %v433_v46  ;;  %v1051_v60 = vpack.c.bf16 %v452_v53, %v451_v52 }
  0x2c   :  { %1040 = vmatprep.subr.bf16.mxu0 %v1039_v24  ;;  %1072 = vmatprep.subr.bf16.mxu1 %v1071_v25  ;;  %v1081_v57 = vpack.c.bf16 %v466_v51, %v465_v50  ;;  %v435_v58 = vld [vmem:[%s1767_s3 + $0x40] sm:$0xff]  ;;  %v436_v59 = vld [vmem:[%s1767_s3 + $0x48] sm:$0xff]  ;;  %v1083_v61 = vpack.c.bf16 %v484_v55, %v483_v54  ;;  %v453_v0 = vld [vmem:[%s1767_s3 + $0xd0] sm:$0xff] }
  0x2d   :  { %v467_v62 = vld [vmem:[%s1767_s3 + $0x140] sm:$0xff]  ;;  %v468_v63 = vld [vmem:[%s1767_s3 + $0x148] sm:$0xff]  ;;  %v454_v1 = vld [vmem:[%s1767_s3 + $0xd8] sm:$0xff]  ;;  %v1053_v4 = vpack.c.bf16 %v436_v59, %v435_v58 }
  0x2e   :  { %v485_v2 = vld [vmem:[%s1767_s3 + $0x1d0] sm:$0xff]  ;;  %v486_v3 = vld [vmem:[%s1767_s3 + $0x1d8] sm:$0xff]  ;;  %v1085_v5 = vpack.c.bf16 %v468_v63, %v467_v62  ;;  %v1055_v9 = vpack.c.bf16 %v454_v1, %v453_v0  ;;  %v455_v13 = vld [vmem:[%s1767_s3 + $0xe0] sm:$0xff] }
  0x2f   :  { %1042 = vmatpush3.bf16.msra.mxu0 %v1041_v32  ;;  %1074 = vmatpush3.bf16.msra.mxu1 %v1073_v33  ;;  %v437_v6 = vld [vmem:[%s1767_s3 + $0x50] sm:$0xff]  ;;  %v438_v8 = vld [vmem:[%s1767_s3 + $0x58] sm:$0xff]  ;;  %v1087_v10 = vpack.c.bf16 %v486_v3, %v485_v2  ;;  %v456_v14 = vld [vmem:[%s1767_s3 + $0xe8] sm:$0xff] }
  0x30   :  { %1044 = vmatprep.subr.bf16.mxu0 %v1043_v36  ;;  %1076 = vmatprep.subr.bf16.mxu1 %v1075_v37  ;;  %v469_v11 = vld [vmem:[%s1767_s3 + $0x150] sm:$0xff]  ;;  %v470_v12 = vld [vmem:[%s1767_s3 + $0x158] sm:$0xff]  ;;  %v487_v15 = vld [vmem:[%s1767_s3 + $0x1e0] sm:$0xff]  ;;  %v1057_v17 = vpack.c.bf16 %v438_v8, %v437_v6  ;;  %v1059_v20 = vpack.c.bf16 %v456_v14, %v455_v13 }
  0x31   :  { %v488_v16 = vld [vmem:[%s1767_s3 + $0x1e8] sm:$0xff]  ;;  %v1089_v18 = vpack.c.bf16 %v470_v12, %v469_v11  ;;  %v439_v19 = vld [vmem:[%s1767_s3 + $0x60] sm:$0xff]  ;;  %v457_v26 = vld [vmem:[%s1767_s3 + $0xf0] sm:$0xff] }
  0x32   :  { %v1091_v21 = vpack.c.bf16 %v488_v16, %v487_v15  ;;  %v440_v22 = vld [vmem:[%s1767_s3 + $0x68] sm:$0xff]  ;;  %v471_v7 = vld [vmem:[%s1767_s3 + $0x160] sm:$0xff]  ;;  %v458_v27 = vld [vmem:[%s1767_s3 + $0xf8] sm:$0xff] }
  0x33   :  { %1046 = vmatpush3.bf16.msra.mxu0 %v1045_v44  ;;  %1078 = vmatpush3.bf16.msra.mxu1 %v1077_v45  ;;  %v472_v23 = vld [vmem:[%s1767_s3 + $0x168] sm:$0xff]  ;;  %v1061_v24 = vpack.c.bf16 %v440_v22, %v439_v19  ;;  %v489_v28 = vld [vmem:[%s1767_s3 + $0x1f0] sm:$0xff]  ;;  %v1063_v29 = vpack.c.bf16 %v458_v27, %v457_v26  ;;  %v490_v30 = vld [vmem:[%s1767_s3 + $0x1f8] sm:$0xff]  ;;  %v92_v44 = vlaneseq }
  0x34   :  { %1048 = vmatprep.subr.bf16.mxu0 %v1047_v48  ;;  %1080 = vmatprep.subr.bf16.mxu1 %v1079_v49  ;;  %v1093_v25 = vpack.c.bf16 %v472_v23, %v471_v7  ;;  %v441_v31 = vld [vmem:[%s1767_s3 + $0x70] sm:$0xff]  ;;  %v442_v32 = vld [vmem:[%s1767_s3 + $0x78] sm:$0xff]  ;;  %v1095_v33 = vpack.c.bf16 %v490_v30, %v489_v28  ;;  %v507_v38 = vld [vmem:[%s1767_s3 + $0x280] sm:$0xff] }
  0x35   :  { %v1065_v34 = vpack.c.bf16 %v442_v32, %v441_v31  ;;  %v473_v35 = vld [vmem:[%s1767_s3 + $0x170] sm:$0xff]  ;;  %v474_v36 = vld [vmem:[%s1767_s3 + $0x178] sm:$0xff]  ;;  %v508_v39 = vld [vmem:[%s1767_s3 + $0x288] sm:$0xff]  ;;  %v1540_v45 = vshrl.u32 %v92_v44, 7 }
  0x36   :  { %v1097_v37 = vpack.c.bf16 %v474_v36, %v473_v35  ;;  %v539_v40 = vld [vmem:[%s1767_s3 + $0x380] sm:$0xff]  ;;  %v1099_v41 = vpack.c.bf16 %v508_v39, %v507_v38  ;;  %v540_v42 = vld [vmem:[%s1767_s3 + $0x388] sm:$0xff]  ;;  %v509_v1 = vld [vmem:[%s1767_s3 + $0x290] sm:$0xff] }
  0x37   :  { %1050 = vmatpush3.bf16.msra.mxu0 %v1049_v56  ;;  %1082 = vmatpush3.bf16.msra.mxu1 %v1081_v57  ;;  %v1131_v43 = vpack.c.bf16 %v540_v42, %v539_v40  ;;  %v94_v46 = vsub.s32 0, %v1540_v45  ;;  %v102_v47 = vsub.s32 2, %v1540_v45  ;;  %v1547_v48 = vld [vmem:[%s1766_s2] sm:$0xff]  ;;  %v98_v49 = vsub.s32 1, %v1540_v45  ;;  %v492_v58 = vld [vmem:[%s1767_s3 + $0x208] sm:$0xff]  ;;  %v542_v6 = vld [vmem:[%s1767_s3 + $0x398] sm:$0xff] }
  0x38   :  { %1052 = vmatprep.subr.bf16.mxu0 %v1051_v60  ;;  %1084 = vmatprep.subr.bf16.mxu1 %v1083_v61  ;;  %v106_v50 = vsub.s32 3, %v1540_v45  ;;  %v491_v57 = vld [vmem:[%s1767_s3 + $0x200] sm:$0xff]  ;;  %v524_v0 = vld [vmem:[%s1767_s3 + $0x308] sm:$0xff]  ;;  %v114_v8 = vsub.s32 5, %v1540_v45  ;;  %v493_v15 = vld [vmem:[%s1767_s3 + $0x210] sm:$0xff] }
  0x39   :  { %v95_v51 = vrot.slane %v1547_v48, %v94_v46  ;;  %v103_v52 = vrot.slane %v1547_v48, %v102_v47  ;;  %v99_v53 = vrot.slane %v1547_v48, %v98_v49  ;;  %v523_v63 = vld [vmem:[%s1767_s3 + $0x300] sm:$0xff]  ;;  %v1101_v13 = vpack.c.bf16 %v492_v58, %v491_v57  ;;  %v494_v16 = vld [vmem:[%s1767_s3 + $0x218] sm:$0xff]  ;;  %v512_v7 = vld [vmem:[%s1767_s3 + $0x2a8] sm:$0xff] }
  0x3a   :  { %v107_v54 = vrot.slane %v1547_v48, %v106_v50  ;;  %v1133_v14 = vpack.c.bf16 %v524_v0, %v523_v63  ;;  %v511_v22 = vld [vmem:[%s1767_s3 + $0x2a0] sm:$0xff]  ;;  %v1105_v27 = vpack.c.bf16 %v494_v16, %v493_v15  ;;  %v496_v30 = vld [vmem:[%s1767_s3 + $0x228] sm:$0xff]  ;;  %v514_v40 = vld [vmem:[%s1767_s3 + $0x2b8] sm:$0xff] }
  0x3b   :  { %1054 = vmatpush3.bf16.msra.mxu0 %v1053_v4  ;;  %1086 = vmatpush3.bf16.msra.mxu1 %v1085_v5  ;;  %v510_v4 = vld [vmem:[%s1767_s3 + $0x298] sm:$0xff]  ;;  %v541_v5 = vld [vmem:[%s1767_s3 + $0x390] sm:$0xff]  ;;  %v543_v23 = vld [vmem:[%s1767_s3 + $0x3a0] sm:$0xff] }
  0x3c   :  { %1056 = vmatprep.subr.bf16.mxu0 %v1055_v9  ;;  %1088 = vmatprep.subr.bf16.mxu1 %v1087_v10  ;;  %v122_v9 = vsub.s32 7, %v1540_v45  ;;  %v1135_v19 = vpack.c.bf16 %v542_v6, %v541_v5  ;;  %v527_v35 = vld [vmem:[%s1767_s3 + $0x320] sm:$0xff]  ;;  %v528_v36 = vld [vmem:[%s1767_s3 + $0x328] sm:$0xff]  ;;  %v546_v42 = vld [vmem:[%s1767_s3 + $0x3b8] sm:$0xff] }
  0x3d   :  { %v1141_v47 = vpack.c.bf16 %v528_v36, %v527_v35  ;;  %v497_v49 = vld [vmem:[%s1767_s3 + $0x230] sm:$0xff]  ;;  %v498_v50 = vld [vmem:[%s1767_s3 + $0x238] sm:$0xff]  ;;  %v515_v57 = vld [vmem:[%s1767_s3 + $0x2c0] sm:$0xff] }
  0x3e   :  { %v123_v26 = vrot.slane %v1547_v48, %v122_v9  ;;  %v516_v58 = vld [vmem:[%s1767_s3 + $0x2c8] sm:$0xff]  ;;  %v499_v63 = vld [vmem:[%s1767_s3 + $0x240] sm:$0xff]  ;;  %v517_v5 = vld [vmem:[%s1767_s3 + $0x2d0] sm:$0xff] }
  0x3f   :  { %1058 = vmatpush3.bf16.msra.mxu0 %v1057_v17  ;;  %1090 = vmatpush3.bf16.msra.mxu1 %v1089_v18  ;;  %v1103_v18 = vpack.c.bf16 %v510_v4, %v509_v1  ;;  %v500_v0 = vld [vmem:[%s1767_s3 + $0x248] sm:$0xff]  ;;  %v1115_v1 = vpack.c.bf16 %v516_v58, %v515_v57  ;;  %v518_v6 = vld [vmem:[%s1767_s3 + $0x2d8] sm:$0xff]  ;;  %v533_v16 = vld [vmem:[%s1767_s3 + $0x350] sm:$0xff] }
  0x40   :  { %1060 = vmatprep.subr.bf16.mxu0 %v1059_v20  ;;  %1092 = vmatprep.subr.bf16.mxu1 %v1091_v21  ;;  %v525_v20 = vld [vmem:[%s1767_s3 + $0x310] sm:$0xff]  ;;  %v526_v21 = vld [vmem:[%s1767_s3 + $0x318] sm:$0xff]  ;;  %v532_v4 = vld [vmem:[%s1767_s3 + $0x348] sm:$0xff] }
  0x41   :  { %v1137_v28 = vpack.c.bf16 %v526_v21, %v525_v20  ;;  %v550_v9 = vld [vmem:[%s1767_s3 + $0x3d8] sm:$0xff]  ;;  %v551_v20 = vld [vmem:[%s1767_s3 + $0x3e0] sm:$0xff]  ;;  %v552_v21 = vld [vmem:[%s1767_s3 + $0x3e8] sm:$0xff] }
  0x42   :  { %v554_v35 = vld [vmem:[%s1767_s3 + $0x3f8] sm:$0xff] }
  0x43   :  { %1062 = vmatpush3.bf16.msra.mxu0 %v1061_v24  ;;  %1094 = vmatpush3.bf16.msra.mxu1 %v1093_v25  ;;  %v544_v24 = vld [vmem:[%s1767_s3 + $0x3a8] sm:$0xff]  ;;  %v115_v25 = vrot.slane %v1547_v48, %v114_v8  ;;  %v549_v8 = vld [vmem:[%s1767_s3 + $0x3d0] sm:$0xff] }
  0x44   :  { %1064 = vmatprep.subr.bf16.mxu0 %v1063_v29  ;;  %1096 = vmatprep.subr.bf16.mxu1 %v1095_v33  ;;  %v495_v29 = vld [vmem:[%s1767_s3 + $0x220] sm:$0xff]  ;;  %v1107_v33 = vpack.c.bf16 %v512_v7, %v511_v22  ;;  %v1151_v15 = vpack.c.bf16 %v550_v9, %v549_v8  ;;  %v118_v22 = vsub.s32 6, %v1540_v45 }
  0x45   :  { %v1109_v46 = vpack.c.bf16 %v496_v30, %v495_v29  ;;  %v535_v29 = vld [vmem:[%s1767_s3 + $0x360] sm:$0xff]  ;;  %v536_v30 = vld [vmem:[%s1767_s3 + $0x368] sm:$0xff] }
  0x46   :  { %v119_v36 = vrot.slane %v1547_v48, %v118_v22 }
  0x47   :  { %1066 = vmatpush3.bf16.msra.mxu0 %v1065_v34  ;;  %1098 = vmatpush3.bf16.msra.mxu1 %v1097_v37  ;;  %v1139_v34 = vpack.c.bf16 %v544_v24, %v543_v23  ;;  %v513_v37 = vld [vmem:[%s1767_s3 + $0x2b0] sm:$0xff]  ;;  %v503_v24 = vld [vmem:[%s1767_s3 + $0x260] sm:$0xff] }
  0x48   :  { %1100 = vmatprep.subr.bf16.mxu0 %v1099_v41  ;;  %1132 = vmatprep.subr.bf16.mxu1 %v1131_v43  ;;  %v545_v41 = vld [vmem:[%s1767_s3 + $0x3b0] sm:$0xff] }
  0xf5   :  { %v201_v55 = vpop.f32.mrb[0].mxu0  ;;  %v272_v56 = vpop.f32.mrb[0].mxu1 }
  0xf6   :  { %v202_v59 = vadd.f32 %v201_v55, %v95_v51  ;;  %v273_v60 = vadd.f32 %v272_v56, %v103_v52  ;;  %v203_v61 = vpop.f32.mrb[1].mxu0  ;;  %v274_v62 = vpop.f32.mrb[1].mxu1  ;;  %v529_v55 = vld [vmem:[%s1767_s3 + $0x330] sm:$0xff]  ;;  %v530_v56 = vld [vmem:[%s1767_s3 + $0x338] sm:$0xff] }
  0xf7   :  { %v204_v2 = vadd.f32 %v203_v61, %v99_v53  ;;  %v275_v3 = vadd.f32 %v274_v62, %v107_v54  ;;  %v1111_v53 = vpack.c.bf16 %v514_v40, %v513_v37  ;;  %v1143_v54 = vpack.c.bf16 %v546_v42, %v545_v41 }
  0xf8   :  { %v421_v10 = vmax.f32 %v273_v60, 0.0  ;;  %v419_v17 = vmax.f32 %v202_v59, 0.0  ;;  %v547_v59 = vld [vmem:[%s1767_s3 + $0x3c0] sm:$0xff]  ;;  %v548_v60 = vld [vmem:[%s1767_s3 + $0x3c8] sm:$0xff]  ;;  %v1113_v61 = vpack.c.bf16 %v498_v50, %v497_v49  ;;  %v1145_v62 = vpack.c.bf16 %v530_v56, %v529_v55 }
  0xf9   :  { %v420_v11 = vmax.f32 %v204_v2, 0.0  ;;  %v422_v12 = vmax.f32 %v275_v3, 0.0  ;;  %v1147_v2 = vpack.c.bf16 %v548_v60, %v547_v59  ;;  %v531_v3 = vld [vmem:[%s1767_s3 + $0x340] sm:$0xff] }
  0xfb   :  { %626 = vmatprep.mubr.f32.mxu0 %v420_v11  ;;  %696 = vmatprep.mubr.f32.mxu1 %v422_v12  ;;  %v1149_v11 = vpack.c.bf16 %v532_v4, %v531_v3  ;;  %v501_v12 = vld [vmem:[%s1767_s3 + $0x250] sm:$0xff] }
  0xfc   :  { %627 = vmatmul.mubr.f32.vlgmr.msra.gmra.mrb[4].mxu0 %v419_v17  ;;  %697 = vmatmul.mubr.f32.vlgmr.msra.gmra.mrb[4].mxu1 %v421_v10  ;;  %v1117_v10 = vpack.c.bf16 %v500_v0, %v499_v63  ;;  %v534_v17 = vld [vmem:[%s1767_s3 + $0x358] sm:$0xff] }
  0xfd   :  { %1102 = vmatpush3.bf16.msra.mxu0 %v1101_v13  ;;  %1134 = vmatpush3.bf16.msra.mxu1 %v1133_v14  ;;  %v1613_v31 = vpop.f32.mrb[2].mxu0  ;;  %v1615_v32 = vpop.f32.mrb[2].mxu1  ;;  %v502_v13 = vld [vmem:[%s1767_s3 + $0x258] sm:$0xff]  ;;  %v1119_v14 = vpack.c.bf16 %v518_v6, %v517_v5  ;;  %v1153_v23 = vpack.c.bf16 %v534_v17, %v533_v16 }
  0xfe   :  { %1104 = vmatprep.subr.bf16.mxu0 %v1103_v18  ;;  %1136 = vmatprep.subr.bf16.mxu1 %v1135_v19  ;;  %v345_v38 = vpop.f32.mrb[3].mxu0  ;;  %v416_v39 = vpop.f32.mrb[3].mxu1  ;;  %v519_v18 = vld [vmem:[%s1767_s3 + $0x2e0] sm:$0xff]  ;;  %v520_v19 = vld [vmem:[%s1767_s3 + $0x2e8] sm:$0xff]  ;;  %v1121_v7 = vpack.c.bf16 %v502_v13, %v501_v12 }
  0xff   :  { %v346_v43 = vadd.f32 %v345_v38, %v115_v25  ;;  %v417_v44 = vadd.f32 %v416_v39, %v123_v26  ;;  %v504_v25 = vld [vmem:[%s1767_s3 + $0x268] sm:$0xff]  ;;  %v110_v26 = vsub.s32 4, %v1540_v45  ;;  %v553_v45 = vld [vmem:[%s1767_s3 + $0x3f0] sm:$0xff]  ;;  %v1157_v38 = vpack.c.bf16 %v536_v30, %v535_v29 }
 0x100   :  { %v1125_v37 = vpack.c.bf16 %v504_v25, %v503_v24  ;;  %v505_v39 = vld [vmem:[%s1767_s3 + $0x270] sm:$0xff]  ;;  %v1159_v42 = vpack.c.bf16 %v554_v35, %v553_v45 }
 0x101   :  { %1106 = vmatpush3.bf16.msra.mxu0 %v1105_v27  ;;  %1138 = vmatpush3.bf16.msra.mxu1 %v1137_v28  ;;  %v424_v51 = vmax.f32 %v346_v43, 0.0  ;;  %v426_v52 = vmax.f32 %v417_v44, 0.0  ;;  %v1123_v27 = vpack.c.bf16 %v520_v19, %v519_v18  ;;  %v1155_v28 = vpack.c.bf16 %v552_v21, %v551_v20  ;;  %v506_v43 = vld [vmem:[%s1767_s3 + $0x278] sm:$0xff]  ;;  %v537_v44 = vld [vmem:[%s1767_s3 + $0x370] sm:$0xff] }
 0x102   :  { %1108 = vmatprep.subr.bf16.mxu0 %v1107_v33  ;;  %1140 = vmatprep.subr.bf16.mxu1 %v1139_v34  ;;  %v521_v33 = vld [vmem:[%s1767_s3 + $0x2f0] sm:$0xff]  ;;  %v522_v34 = vld [vmem:[%s1767_s3 + $0x2f8] sm:$0xff]  ;;  %v111_v40 = vrot.slane %v1547_v48, %v110_v26  ;;  %v1129_v48 = vpack.c.bf16 %v506_v43, %v505_v39 }
 0x103   :  { %766 = vmatprep.mubr.f32.mxu0 %v424_v51  ;;  %836 = vmatprep.mubr.f32.mxu1 %v426_v52  ;;  %v1127_v41 = vpack.c.bf16 %v522_v34, %v521_v33 }
 0x104   :  { %v344_v50 = vadd.f32 %v1613_v31, %v111_v40 }
 0x105   :  { %1110 = vmatpush3.bf16.msra.mxu0 %v1109_v46  ;;  %1142 = vmatpush3.bf16.msra.mxu1 %v1141_v47  ;;  %v538_v46 = vld [vmem:[%s1767_s3 + $0x378] sm:$0xff]  ;;  %v415_v47 = vadd.f32 %v1615_v32, %v119_v36  ;;  %v862_v32 = vld [vmem:[%s1768_s4] ss:$0 sm:$0xff]  ;;  %s1165_s4 = scalar_lea.vmem %s851_s20, 32 }
 0x106   :  { %1112 = vmatprep.subr.bf16.mxu0 %v1111_v53  ;;  %1144 = vmatprep.subr.bf16.mxu1 %v1143_v54  ;;  %v1161_v49 = vpack.c.bf16 %v538_v46, %v537_v44  ;;  %v423_v52 = vmax.f32 %v344_v50, 0.0  ;;  %p1166_p0 = scmp.ne.s32.totalorder %s851_s20, %s1165_s4  ;;  %p1171_p2 = scmp.lt.s32.totalorder %s1165_s4, %s1165_s4 }
 0x107   :  { %v425_v51 = vmax.f32 %v415_v47, 0.0 }
 0x108   :  { %p1172_p3 = por %p1171_p2, %p1170_p1 }
 0x109   :  { %1114 = vmatpush3.bf16.msra.mxu0 %v1113_v61  ;;  %1146 = vmatpush3.bf16.msra.mxu1 %v1145_v62 }
 0x10a   :  { %1116 = vmatprep.subr.bf16.mxu0 %v1115_v1  ;;  %1148 = vmatprep.subr.bf16.mxu1 %v1147_v2  ;;  %p1173_p4 = pnand %p1172_p3, %p1166_p0 }
 0x10d   :  { %1118 = vmatpush3.bf16.msra.mxu0 %v1117_v10  ;;  %1150 = vmatpush3.bf16.msra.mxu1 %v1149_v11 }
 0x10e   :  { %1120 = vmatprep.subr.bf16.mxu0 %v1119_v14  ;;  %1152 = vmatprep.subr.bf16.mxu1 %v1151_v15 }
 0x111   :  { %1122 = vmatpush3.bf16.msra.mxu0 %v1121_v7  ;;  %1154 = vmatpush3.bf16.msra.mxu1 %v1153_v23 }
 0x112   :  { %1124 = vmatprep.subr.bf16.mxu0 %v1123_v27  ;;  %1156 = vmatprep.subr.bf16.mxu1 %v1155_v28 }
 0x115   :  { %1126 = vmatpush3.bf16.msra.mxu0 %v1125_v37  ;;  %1158 = vmatpush3.bf16.msra.mxu1 %v1157_v38 }
 0x116   :  { %1128 = vmatprep.subr.bf16.mxu0 %v1127_v41  ;;  %1160 = vmatprep.subr.bf16.mxu1 %v1159_v42 }
 0x119   :  { %1130 = vmatpush3.bf16.msra.mxu0 %v1129_v48  ;;  %1162 = vmatpush3.bf16.msra.mxu1 %v1161_v49 }
 0x11c   :  { %767 = vmatmul.mubr.f32.vlgmr.msra.gmra.mrb[6].mxu0 %v423_v52  ;;  %837 = vmatmul.mubr.f32.vlgmr.msra.gmra.mrb[6].mxu1 %v425_v51 }
 0x1cf   :  { %v895_v53 = vpop.f32.mrb[4].mxu0  ;;  %v930_v54 = vpop.f32.mrb[4].mxu1 }
 0x1d0   :  { %v896_v55 = vpop.f32.mrb[5].mxu0  ;;  %v931_v56 = vpop.f32.mrb[5].mxu1 }
 0x1d1   :  { %v897_v57 = vadd.f32 %v896_v55, %v895_v53  ;;  %v932_v58 = vadd.f32 %v931_v56, %v930_v54 }
 0x1d3   :  { %v629_v59 = vadd.f32 %v897_v57, %v862_v32 }
 0x1d5   :  { %v699_v31 = vadd.f32 %v932_v58, %v629_v59 }
 0x1ef   :  { %v965_v60 = vpop.f32.mrb[6].mxu0  ;;  %v1000_v61 = vpop.f32.mrb[6].mxu1 }
 0x1f0   :  { %v966_v62 = vpop.f32.mrb[7].mxu0  ;;  %v1001_v63 = vpop.f32.mrb[7].mxu1 }
 0x1f1   :  { %v967_v0 = vadd.f32 %v966_v62, %v965_v60  ;;  %v1002_v1 = vadd.f32 %v1001_v63, %v1000_v61 }
 0x1f3   :  { %v769_v2 = vadd.f32 %v967_v0, %v699_v31 }
 0x1f5   :  { %v839_v3 = vadd.f32 %v1002_v1, %v769_v2 }
 0x1f7   :  { %843 = vst.msk [vmem:[#allocation3] sm:$0x3] %vm842_vm3, %v839_v3 }
 0x1f8   :  { %1176 = shalt.err (!%p1173_p4)
}
 0x1f9   :  { %s1177_s23 = scalar_lea.hbm %s1769_s5, 32 }
 0x1fa   :  { %p1178_p5 = scmp.ne.s32.totalorder %s1769_s5, %s1177_s23  ;;  %p1181_p6 = scmp.lt.u32.totalorder %s1177_s23, %s1769_s5 }
 0x1fc   :  { %p1183_p7 = pnand %p1181_p6, %p1178_p5 }
 0x1fe   :  { %1186 = shalt.err (!%p1183_p7)
}
 0x1ff   :  { %853 = dma.vmem_to_hbm [thread:$0]  %s851_s20, 32, %s1769_s5, [#allocation4]  }
 0x200   :  { %1187 = dma.done.wait [#allocation4], 32  }
 0x201   :  { %1188 = vsyncadd [#allocation4], 4294967264 }
 0x202   :  { %857 = vsyncpa [#allocation4], 1 }

</bundles_post_ra>
